<compile_context>
chip_gen: v7x
topology: tpu7x:2x2x1
jax: 0.10.0
libtpu: 0.0.40
codegen_flags: <defaults>
</compile_context>

<pallas_src>
import math
import functools

import jax
import jax.numpy as jnp
from jax.experimental import pallas as pl
from jax.experimental.pallas import tpu as pltpu

# ---------------- tiny-BERT config (structure mirrors bert-base-cased) ----------------
VOCAB = 128
HIDDEN = 32
N_LAYERS = 2
N_HEADS = 2
HEAD_DIM = HIDDEN // N_HEADS
INTERMEDIATE = 64
MAX_POS = 16
TYPE_VOCAB = 2
NUM_LABELS = 2
LN_EPS = 1e-12

BATCH = 2
SEQ = 8

# Order of the stacked per-layer tensors (must match _encoder_kernel signature).
LAYER_KEYS = ("wqkv", "bqkv", "wo", "bo", "ln1_g", "ln1_b",
              "wi", "bi", "wo2", "bo2", "ln2_g", "ln2_b")


def _vmem_spec():
    return pl.BlockSpec(memory_space=pltpu.MemorySpace.VMEM)


# ---------------- in-kernel helpers ----------------
def _layernorm(h, g, b):
    mu = jnp.mean(h, axis=-1, keepdims=True)
    var = jnp.mean(jnp.square(h - mu), axis=-1, keepdims=True)
    return (h - mu) * jax.lax.rsqrt(var + LN_EPS) * g + b


def _matmul_bias(x_f32, w_bf16, b_f32):
    # bf16 operands on the MXU, f32 accumulation, f32 bias add.
    y = jnp.dot(x_f32.astype(jnp.bfloat16), w_bf16,
                preferred_element_type=jnp.float32)
    return y + b_f32


# ---------------- fused encoder kernel ----------------
# grid = (B, N_LAYERS); dim 0 "parallel" (independent batches, megacore on v7x),
# dim 1 "arbitrary" (sequential layers).  The output block index depends only on
# the batch index, so the activation stays resident in VMEM across all layers.
def _encoder_kernel(tok_ref, pt_ref, eg_ref, eb_ref,
                    wqkv_ref, bqkv_ref, wo_ref, bo_ref, ln1g_ref, ln1b_ref,
                    wi_ref, bi_ref, wo2_ref, bo2_ref, ln2g_ref, ln2b_ref,
                    out_ref):
    # Layer 0: fused embedding add (token + position + type) and embedding LayerNorm.
    @pl.when(pl.program_id(1) == 0)
    def _():
        emb = tok_ref[...] + pt_ref[...]
        out_ref[...] = _layernorm(emb, eg_ref[...], eb_ref[...])

    h = out_ref[...]                                              # (S, H) f32

    # --- fused QKV projection: single (S,H) x (H,3H) matmul ---
    qkv = _matmul_bias(h, wqkv_ref[...], bqkv_ref[...])           # (S, 3H) f32

    # --- multi-head self-attention; heads via static column slices (in-kernel) ---
    # TODO(synk): no attention mask applied (all sequences are full length here).
    scale = 1.0 / math.sqrt(HEAD_DIM)
    ctx_heads = []
    for hh in range(N_HEADS):
        lo = hh * HEAD_DIM
        q_h = (qkv[:, lo:lo + HEAD_DIM] * scale).astype(jnp.bfloat16)
        k_h = qkv[:, HIDDEN + lo:HIDDEN + lo + HEAD_DIM].astype(jnp.bfloat16)
        v_h = qkv[:, 2 * HIDDEN + lo:2 * HIDDEN + lo + HEAD_DIM].astype(jnp.bfloat16)
        s = jax.lax.dot_general(q_h, k_h, (((1,), (1,)), ((), ())),
                                preferred_element_type=jnp.float32)   # (S, S)
        m = jnp.max(s, axis=-1, keepdims=True)
        p = jnp.exp(s - m)
        p = p * pl.reciprocal(jnp.sum(p, axis=-1, keepdims=True), approx=True)
        ctx_heads.append(jnp.dot(p.astype(jnp.bfloat16), v_h,
                                 preferred_element_type=jnp.float32))  # (S, D)
    ctx = jnp.concatenate(ctx_heads, axis=-1)                     # (S, H)

    attn_out = _matmul_bias(ctx, wo_ref[...], bo_ref[...])
    h1 = _layernorm(attn_out + h, ln1g_ref[...], ln1b_ref[...])

    # --- feed-forward ---
    inter = _matmul_bias(h1, wi_ref[...], bi_ref[...])
    # TODO(synk): HF BERT uses exact erf-GELU; tanh-approx GELU used here.
    inter = jax.nn.gelu(inter, approximate=True)
    ffn = _matmul_bias(inter, wo2_ref[...], bo2_ref[...])
    out_ref[...] = _layernorm(ffn + h1, ln2g_ref[...], ln2b_ref[...])


def bert_encoder(tok, pos_typ, emb_g, emb_b, stacked):
    B, S, H = tok.shape

    def lspec(arr):
        nd = arr.ndim
        return pl.BlockSpec((None,) + arr.shape[1:],
                            lambda b, l: (l,) + (0,) * (nd - 1))

    def cspec(arr):
        nd = arr.ndim
        return pl.BlockSpec(arr.shape, lambda b, l: (0,) * nd)

    in_specs = ([pl.BlockSpec((None, S, H), lambda b, l: (b, 0, 0)),   # tok (resident per batch)
                 cspec(pos_typ), cspec(emb_g), cspec(emb_b)]
                + [lspec(stacked[k]) for k in LAYER_KEYS])
    out_spec = pl.BlockSpec((None, S, H), lambda b, l: (b, 0, 0))

    return pl.pallas_call(
        _encoder_kernel,
        out_shape=jax.ShapeDtypeStruct((B, S, H), jnp.float32),
        grid=(B, N_LAYERS),
        in_specs=in_specs,
        out_specs=out_spec,
        compiler_params=pltpu.CompilerParams(
            dimension_semantics=("parallel", "arbitrary")),
    )(tok, pos_typ, emb_g, emb_b, *[stacked[k] for k in LAYER_KEYS])


# ---------------- fused pooler + classifier (+ cross-entropy) kernel ----------------
def _head_kernel(cls_ref, pw_ref, pb_ref, cw_ref, cb_ref, *rest, with_loss):
    if with_loss:
        onehot_ref, logits_ref, loss_ref = rest
    else:
        (logits_ref,) = rest
    pooled = jnp.tanh(jnp.dot(cls_ref[...], pw_ref[...],
                              preferred_element_type=jnp.float32) + pb_ref[...])
    z = jnp.dot(pooled, cw_ref[...], preferred_element_type=jnp.float32) + cb_ref[...]
    logits_ref[...] = z
    if with_loss:
        m = jnp.max(z, axis=-1, keepdims=True)
        lse = m + jnp.log(jnp.sum(jnp.exp(z - m), axis=-1, keepdims=True))
        nll = -jnp.sum(onehot_ref[...] * (z - lse), axis=-1, keepdims=True)  # (B,1)
        loss_ref[...] = jnp.sum(nll, axis=0, keepdims=True) / nll.shape[0]   # (1,1)


def bert_head(cls_tok, pool_w, pool_b, cls_w, cls_b, onehot=None):
    Bn = cls_tok.shape[0]
    if onehot is None:
        return pl.pallas_call(
            functools.partial(_head_kernel, with_loss=False),
            out_shape=jax.ShapeDtypeStruct((Bn, NUM_LABELS), jnp.float32),
            in_specs=[_vmem_spec()] * 5,
            out_specs=_vmem_spec(),
        )(cls_tok, pool_w, pool_b.reshape(1, -1), cls_w, cls_b.reshape(1, -1))
    logits, loss = pl.pallas_call(
        functools.partial(_head_kernel, with_loss=True),
        out_shape=(jax.ShapeDtypeStruct((Bn, NUM_LABELS), jnp.float32),
                   jax.ShapeDtypeStruct((1, 1), jnp.float32)),
        in_specs=[_vmem_spec()] * 6,
        out_specs=(_vmem_spec(), _vmem_spec()),
    )(cls_tok, pool_w, pool_b.reshape(1, -1), cls_w, cls_b.reshape(1, -1), onehot)
    return logits, loss


# ---------------- parameters ----------------
def init_params(key):
    keys = iter(jax.random.split(key, 256))

    def nw(shape):
        return jax.random.normal(next(keys), shape, jnp.float32) * 0.02

    p = {
        "word_emb": nw((VOCAB, HIDDEN)),
        "pos_emb": nw((MAX_POS, HIDDEN)),
        "type_emb": nw((TYPE_VOCAB, HIDDEN)),
        "emb_ln_g": jnp.ones((1, HIDDEN), jnp.float32),
        "emb_ln_b": jnp.zeros((1, HIDDEN), jnp.float32),
        "pool_w": nw((HIDDEN, HIDDEN)),
        "pool_b": jnp.zeros((HIDDEN,), jnp.float32),
        "cls_w": nw((HIDDEN, NUM_LABELS)),
        "cls_b": jnp.zeros((NUM_LABELS,), jnp.float32),
    }

    acc = {k: [] for k in LAYER_KEYS}
    for _ in range(N_LAYERS):
        wq, wk, wv = nw((HIDDEN, HIDDEN)), nw((HIDDEN, HIDDEN)), nw((HIDDEN, HIDDEN))
        acc["wqkv"].append(jnp.concatenate([wq, wk, wv], axis=1))        # (H, 3H)
        acc["bqkv"].append(jnp.zeros((1, 3 * HIDDEN), jnp.float32))
        acc["wo"].append(nw((HIDDEN, HIDDEN)))
        acc["bo"].append(jnp.zeros((1, HIDDEN), jnp.float32))
        acc["ln1_g"].append(jnp.ones((1, HIDDEN), jnp.float32))
        acc["ln1_b"].append(jnp.zeros((1, HIDDEN), jnp.float32))
        acc["wi"].append(nw((HIDDEN, INTERMEDIATE)))
        acc["bi"].append(jnp.zeros((1, INTERMEDIATE), jnp.float32))
        acc["wo2"].append(nw((INTERMEDIATE, HIDDEN)))
        acc["bo2"].append(jnp.zeros((1, HIDDEN), jnp.float32))
        acc["ln2_g"].append(jnp.ones((1, HIDDEN), jnp.float32))
        acc["ln2_b"].append(jnp.zeros((1, HIDDEN), jnp.float32))

    stacked = {k: jnp.stack(v) for k, v in acc.items()}
    # Matmul weights pre-cast to bf16 (halves weight DMA traffic; f32 accumulation).
    for k in ("wqkv", "wo", "wi", "wo2"):
        stacked[k] = stacked[k].astype(jnp.bfloat16)
    p["stacked"] = stacked
    return p


# ---------------- forward ----------------
def bert_forward(params, input_ids, labels=None):
    B, S = input_ids.shape

    # Embedding gather is glue (plain JAX); everything downstream runs in Pallas.
    tok = jnp.take(params["word_emb"], input_ids, axis=0)           # (B,S,H)
    # token_type is 0 everywhere -> fold type embedding into the position rows.
    pos_typ = params["pos_emb"][:S] + params["type_emb"][0]         # (S,H)

    hidden = bert_encoder(tok, pos_typ,
                          params["emb_ln_g"], params["emb_ln_b"],
                          params["stacked"])                        # (B,S,H)

    cls_tok = hidden[:, 0, :]                                       # (B,H)
    if labels is not None:
        onehot = jax.nn.one_hot(labels, NUM_LABELS, dtype=jnp.float32)
        logits, loss = bert_head(cls_tok, params["pool_w"], params["pool_b"],
                                 params["cls_w"], params["cls_b"], onehot)
        return loss[0, 0], logits
    return bert_head(cls_tok, params["pool_w"], params["pool_b"],
                     params["cls_w"], params["cls_b"])


if __name__ == "__main__":
    root = jax.random.PRNGKey(0)
    pkey, dkey, lkey = jax.random.split(root, 3)

    params = init_params(pkey)
    input_ids = jax.random.randint(dkey, (BATCH, SEQ), 0, VOCAB, dtype=jnp.int32)
    labels = jax.random.randint(lkey, (BATCH,), 0, NUM_LABELS, dtype=jnp.int32)

    # forward(text, label) -> (loss, logits)
    loss, logits = bert_forward(params, input_ids, labels)
    # forward(text) -> logits
    logits_only = bert_forward(params, input_ids)

    jax.block_until_ready((loss, logits, logits_only))
    assert logits.shape == (BATCH, NUM_LABELS)
    assert logits_only.shape == (BATCH, NUM_LABELS)
    assert loss.shape == ()
    print("KERNEL_OK")
</pallas_src>

<mosaic_0001>
module attributes {stable_mosaic.version = 11 : i64} {
  func.func @_encoder_kernel(%arg0: i32, %arg1: i32, %arg2: memref<1x8x32xf32, #tpu.memory_space<vmem>>, %arg3: memref<8x32xf32, #tpu.memory_space<vmem>>, %arg4: memref<1x32xf32, #tpu.memory_space<vmem>>, %arg5: memref<1x32xf32, #tpu.memory_space<vmem>>, %arg6: memref<1x32x96xbf16, #tpu.memory_space<vmem>>, %arg7: memref<1x1x96xf32, #tpu.memory_space<vmem>>, %arg8: memref<1x32x32xbf16, #tpu.memory_space<vmem>>, %arg9: memref<1x1x32xf32, #tpu.memory_space<vmem>>, %arg10: memref<1x1x32xf32, #tpu.memory_space<vmem>>, %arg11: memref<1x1x32xf32, #tpu.memory_space<vmem>>, %arg12: memref<1x32x64xbf16, #tpu.memory_space<vmem>>, %arg13: memref<1x1x64xf32, #tpu.memory_space<vmem>>, %arg14: memref<1x64x32xbf16, #tpu.memory_space<vmem>>, %arg15: memref<1x1x32xf32, #tpu.memory_space<vmem>>, %arg16: memref<1x1x32xf32, #tpu.memory_space<vmem>>, %arg17: memref<1x1x32xf32, #tpu.memory_space<vmem>>, %arg18: memref<1x8x32xf32, #tpu.memory_space<vmem>>) attributes {dimension_semantics = [#tpu.dimension_semantics<parallel>, #tpu.dimension_semantics<arbitrary>], iteration_bounds = array<i64: 2, 2>, scalar_prefetch = 0 : i64, scratch_operands = 0 : i64, tpu.core_type = #tpu.core_type<tc>, window_params = [{transform_indices = @transform_0, window_bounds = array<i64: 1, 8, 32>}, {pipeline_mode = #tpu.pipeline_mode<synchronous>, transform_indices = @transform_1, window_bounds = array<i64: 8, 32>}, {pipeline_mode = #tpu.pipeline_mode<synchronous>, transform_indices = @transform_2, window_bounds = array<i64: 1, 32>}, {pipeline_mode = #tpu.pipeline_mode<synchronous>, transform_indices = @transform_3, window_bounds = array<i64: 1, 32>}, {transform_indices = @transform_4, window_bounds = array<i64: 1, 32, 96>}, {transform_indices = @transform_5, window_bounds = array<i64: 1, 1, 96>}, {transform_indices = @transform_6, window_bounds = array<i64: 1, 32, 32>}, {transform_indices = @transform_7, window_bounds = array<i64: 1, 1, 32>}, {transform_indices = @transform_8, window_bounds = array<i64: 1, 1, 32>}, {transform_indices = @transform_9, window_bounds = array<i64: 1, 1, 32>}, {transform_indices = @transform_10, window_bounds = array<i64: 1, 32, 64>}, {transform_indices = @transform_11, window_bounds = array<i64: 1, 1, 64>}, {transform_indices = @transform_12, window_bounds = array<i64: 1, 64, 32>}, {transform_indices = @transform_13, window_bounds = array<i64: 1, 1, 32>}, {transform_indices = @transform_14, window_bounds = array<i64: 1, 1, 32>}, {transform_indices = @transform_15, window_bounds = array<i64: 1, 1, 32>}, {transform_indices = @transform_16, window_bounds = array<i64: 1, 8, 32>}]} {
    %c0_i32 = arith.constant 0 : i32
    %0 = arith.cmpi eq, %arg1, %c0_i32 : i32
    %1 = arith.extui %0 : i1 to i32
    %c0_i32_0 = arith.constant 0 : i32
    %2 = arith.cmpi ne, %1, %c0_i32_0 : i32
    scf.if %2 {
      %c0_69 = arith.constant 0 : index
      %c0_70 = arith.constant 0 : index
      %c0_71 = arith.constant 0 : index
      %150 = vector.load %arg2[%c0_69, %c0_70, %c0_71] : memref<1x8x32xf32, #tpu.memory_space<vmem>>, vector<1x8x32xf32>
      %151 = vector.shape_cast %150 : vector<1x8x32xf32> to vector<8x32xf32>
      %c0_72 = arith.constant 0 : index
      %c0_73 = arith.constant 0 : index
      %152 = vector.load %arg3[%c0_72, %c0_73] : memref<8x32xf32, #tpu.memory_space<vmem>>, vector<8x32xf32>
      %153 = arith.addf %151, %152 : vector<8x32xf32>
      %c0_74 = arith.constant 0 : index
      %c0_75 = arith.constant 0 : index
      %154 = vector.load %arg4[%c0_74, %c0_75] : memref<1x32xf32, #tpu.memory_space<vmem>>, vector<1x32xf32>
      %c0_76 = arith.constant 0 : index
      %c0_77 = arith.constant 0 : index
      %155 = vector.load %arg5[%c0_76, %c0_77] : memref<1x32xf32, #tpu.memory_space<vmem>>, vector<1x32xf32>
      %cst_78 = arith.constant dense<0.000000e+00> : vector<8xf32>
      %156 = vector.multi_reduction <add>, %153, %cst_78 [1] : vector<8x32xf32> to vector<8xf32>
      %157 = vector.shape_cast %156 : vector<8xf32> to vector<8x1xf32>
      %cst_79 = arith.constant 3.200000e+01 : f32
      %158 = vector.broadcast %cst_79 : f32 to vector<8x1xf32>
      %159 = arith.divf %157, %158 : vector<8x1xf32>
      %160 = vector.broadcast %159 : vector<8x1xf32> to vector<8x32xf32>
      %161 = arith.subf %153, %160 : vector<8x32xf32>
      %162 = arith.mulf %161, %161 : vector<8x32xf32>
      %cst_80 = arith.constant dense<0.000000e+00> : vector<8xf32>
      %163 = vector.multi_reduction <add>, %162, %cst_80 [1] : vector<8x32xf32> to vector<8xf32>
      %164 = vector.shape_cast %163 : vector<8xf32> to vector<8x1xf32>
      %cst_81 = arith.constant 3.200000e+01 : f32
      %165 = vector.broadcast %cst_81 : f32 to vector<8x1xf32>
      %166 = arith.divf %164, %165 : vector<8x1xf32>
      %167 = vector.broadcast %159 : vector<8x1xf32> to vector<8x32xf32>
      %168 = arith.subf %153, %167 : vector<8x32xf32>
      %cst_82 = arith.constant 9.99999996E-13 : f32
      %169 = vector.broadcast %cst_82 : f32 to vector<8x1xf32>
      %170 = arith.addf %166, %169 : vector<8x1xf32>
      %171 = math.rsqrt %170 : vector<8x1xf32>
      %172 = vector.broadcast %171 : vector<8x1xf32> to vector<8x32xf32>
      %173 = arith.mulf %168, %172 : vector<8x32xf32>
      %174 = vector.broadcast %154 : vector<1x32xf32> to vector<8x32xf32>
      %175 = arith.mulf %173, %174 : vector<8x32xf32>
      %176 = vector.broadcast %155 : vector<1x32xf32> to vector<8x32xf32>
      %177 = arith.addf %175, %176 : vector<8x32xf32>
      %c0_83 = arith.constant 0 : index
      %c0_84 = arith.constant 0 : index
      %c0_85 = arith.constant 0 : index
      %178 = vector.load %arg18[%c0_83, %c0_84, %c0_85] : memref<1x8x32xf32, #tpu.memory_space<vmem>>, vector<1x8x32xf32>
      %179 = vector.shape_cast %178 : vector<1x8x32xf32> to vector<8x32xf32>
      %180 = vector.shape_cast %177 : vector<8x32xf32> to vector<1x8x32xf32>
      tpu.vector_store %arg18[%c0_83, %c0_84, %c0_85], %180 {strides = array<i32>} : memref<1x8x32xf32, #tpu.memory_space<vmem>>, vector<1x8x32xf32>,
    } else {
    }
    %c0 = arith.constant 0 : index
    %c0_1 = arith.constant 0 : index
    %c0_2 = arith.constant 0 : index
    %3 = vector.load %arg18[%c0, %c0_1, %c0_2] : memref<1x8x32xf32, #tpu.memory_space<vmem>>, vector<1x8x32xf32>
    %4 = vector.shape_cast %3 : vector<1x8x32xf32> to vector<8x32xf32>
    %c0_3 = arith.constant 0 : index
    %c0_4 = arith.constant 0 : index
    %c0_5 = arith.constant 0 : index
    %5 = vector.load %arg6[%c0_3, %c0_4, %c0_5] : memref<1x32x96xbf16, #tpu.memory_space<vmem>>, vector<1x32x96xbf16>
    %6 = vector.shape_cast %5 : vector<1x32x96xbf16> to vector<32x96xbf16>
    %c0_6 = arith.constant 0 : index
    %c0_7 = arith.constant 0 : index
    %c0_8 = arith.constant 0 : index
    %7 = vector.load %arg7[%c0_6, %c0_7, %c0_8] : memref<1x1x96xf32, #tpu.memory_space<vmem>>, vector<1x1x96xf32>
    %8 = vector.shape_cast %7 : vector<1x1x96xf32> to vector<1x96xf32>
    %9 = arith.truncf %4 : vector<8x32xf32> to vector<8x32xbf16>
    %cst = arith.constant dense<0.000000e+00> : vector<8x96xf32>
    %10 = tpu.matmul %9, %6, %cst {dimension_numbers = #tpu.dot_dimension_numbers<[1], [0], [0], [1], [0, 0, 1, 1], [], []>} : vector<8x32xbf16>, vector<32x96xbf16>, vector<8x96xf32> -> vector<8x96xf32>
    %11 = vector.broadcast %8 : vector<1x96xf32> to vector<8x96xf32>
    %12 = arith.addf %10, %11 : vector<8x96xf32>
    %13 = vector.extract_strided_slice %12 {offsets = [0, 0], sizes = [8, 16], strides = [1, 1]} : vector<8x96xf32> to vector<8x16xf32>
    %cst_9 = arith.constant 2.500000e-01 : f32
    %14 = vector.broadcast %cst_9 : f32 to vector<8x16xf32>
    %15 = arith.mulf %13, %14 : vector<8x16xf32>
    %16 = arith.truncf %15 : vector<8x16xf32> to vector<8x16xbf16>
    %17 = vector.extract_strided_slice %12 {offsets = [0, 32], sizes = [8, 16], strides = [1, 1]} : vector<8x96xf32> to vector<8x16xf32>
    %18 = arith.truncf %17 : vector<8x16xf32> to vector<8x16xbf16>
    %19 = vector.extract_strided_slice %12 {offsets = [0, 64], sizes = [8, 16], strides = [1, 1]} : vector<8x96xf32> to vector<8x16xf32>
    %20 = arith.truncf %19 : vector<8x16xf32> to vector<8x16xbf16>
    %cst_10 = arith.constant dense<0.000000e+00> : vector<8x8xf32>
    %21 = tpu.matmul %16, %18, %cst_10 {dimension_numbers = #tpu.dot_dimension_numbers<[1], [1], [0], [0], [0, 0, 1, 0], [], []>} : vector<8x16xbf16>, vector<8x16xbf16>, vector<8x8xf32> -> vector<8x8xf32>
    %cst_11 = arith.constant dense<0xFF800000> : vector<8xf32>
    %22 = vector.multi_reduction <maximumf>, %21, %cst_11 [1] : vector<8x8xf32> to vector<8xf32>
    %23 = vector.shape_cast %22 : vector<8xf32> to vector<8x1xf32>
    %24 = vector.broadcast %23 : vector<8x1xf32> to vector<8x8xf32>
    %25 = arith.subf %21, %24 : vector<8x8xf32>
    %26 = math.exp %25 : vector<8x8xf32>
    %cst_12 = arith.constant dense<0.000000e+00> : vector<8xf32>
    %27 = vector.multi_reduction <add>, %26, %cst_12 [1] : vector<8x8xf32> to vector<8xf32>
    %28 = vector.shape_cast %27 : vector<8xf32> to vector<8x1xf32>
    %29 = tpu.reciprocal %28 {approx = true} : vector<8x1xf32> -> vector<8x1xf32>
    %30 = vector.broadcast %29 : vector<8x1xf32> to vector<8x8xf32>
    %31 = arith.mulf %26, %30 : vector<8x8xf32>
    %32 = arith.truncf %31 : vector<8x8xf32> to vector<8x8xbf16>
    %cst_13 = arith.constant dense<0.000000e+00> : vector<8x16xf32>
    %33 = tpu.matmul %32, %20, %cst_13 {dimension_numbers = #tpu.dot_dimension_numbers<[1], [0], [0], [1], [0, 0, 1, 1], [], []>} : vector<8x8xbf16>, vector<8x16xbf16>, vector<8x16xf32> -> vector<8x16xf32>
    %34 = vector.extract_strided_slice %12 {offsets = [0, 16], sizes = [8, 16], strides = [1, 1]} : vector<8x96xf32> to vector<8x16xf32>
    %cst_14 = arith.constant 2.500000e-01 : f32
    %35 = vector.broadcast %cst_14 : f32 to vector<8x16xf32>
    %36 = arith.mulf %34, %35 : vector<8x16xf32>
    %37 = arith.truncf %36 : vector<8x16xf32> to vector<8x16xbf16>
    %38 = vector.extract_strided_slice %12 {offsets = [0, 48], sizes = [8, 16], strides = [1, 1]} : vector<8x96xf32> to vector<8x16xf32>
    %39 = arith.truncf %38 : vector<8x16xf32> to vector<8x16xbf16>
    %40 = vector.extract_strided_slice %12 {offsets = [0, 80], sizes = [8, 16], strides = [1, 1]} : vector<8x96xf32> to vector<8x16xf32>
    %41 = arith.truncf %40 : vector<8x16xf32> to vector<8x16xbf16>
    %cst_15 = arith.constant dense<0.000000e+00> : vector<8x8xf32>
    %42 = tpu.matmul %37, %39, %cst_15 {dimension_numbers = #tpu.dot_dimension_numbers<[1], [1], [0], [0], [0, 0, 1, 0], [], []>} : vector<8x16xbf16>, vector<8x16xbf16>, vector<8x8xf32> -> vector<8x8xf32>
    %cst_16 = arith.constant dense<0xFF800000> : vector<8xf32>
    %43 = vector.multi_reduction <maximumf>, %42, %cst_16 [1] : vector<8x8xf32> to vector<8xf32>
    %44 = vector.shape_cast %43 : vector<8xf32> to vector<8x1xf32>
    %45 = vector.broadcast %44 : vector<8x1xf32> to vector<8x8xf32>
    %46 = arith.subf %42, %45 : vector<8x8xf32>
    %47 = math.exp %46 : vector<8x8xf32>
    %cst_17 = arith.constant dense<0.000000e+00> : vector<8xf32>
    %48 = vector.multi_reduction <add>, %47, %cst_17 [1] : vector<8x8xf32> to vector<8xf32>
    %49 = vector.shape_cast %48 : vector<8xf32> to vector<8x1xf32>
    %50 = tpu.reciprocal %49 {approx = true} : vector<8x1xf32> -> vector<8x1xf32>
    %51 = vector.broadcast %50 : vector<8x1xf32> to vector<8x8xf32>
    %52 = arith.mulf %47, %51 : vector<8x8xf32>
    %53 = arith.truncf %52 : vector<8x8xf32> to vector<8x8xbf16>
    %cst_18 = arith.constant dense<0.000000e+00> : vector<8x16xf32>
    %54 = tpu.matmul %53, %41, %cst_18 {dimension_numbers = #tpu.dot_dimension_numbers<[1], [0], [0], [1], [0, 0, 1, 1], [], []>} : vector<8x8xbf16>, vector<8x16xbf16>, vector<8x16xf32> -> vector<8x16xf32>
    %55 = tpu.concatenate %33, %54 in 1 : vector<8x16xf32>, vector<8x16xf32> -> vector<8x32xf32>
    %c0_19 = arith.constant 0 : index
    %c0_20 = arith.constant 0 : index
    %c0_21 = arith.constant 0 : index
    %56 = vector.load %arg8[%c0_19, %c0_20, %c0_21] : memref<1x32x32xbf16, #tpu.memory_space<vmem>>, vector<1x32x32xbf16>
    %57 = vector.shape_cast %56 : vector<1x32x32xbf16> to vector<32x32xbf16>
    %c0_22 = arith.constant 0 : index
    %c0_23 = arith.constant 0 : index
    %c0_24 = arith.constant 0 : index
    %58 = vector.load %arg9[%c0_22, %c0_23, %c0_24] : memref<1x1x32xf32, #tpu.memory_space<vmem>>, vector<1x1x32xf32>
    %59 = vector.shape_cast %58 : vector<1x1x32xf32> to vector<1x32xf32>
    %60 = arith.truncf %55 : vector<8x32xf32> to vector<8x32xbf16>
    %cst_25 = arith.constant dense<0.000000e+00> : vector<8x32xf32>
    %61 = tpu.matmul %60, %57, %cst_25 {dimension_numbers = #tpu.dot_dimension_numbers<[1], [0], [0], [1], [0, 0, 1, 1], [], []>} : vector<8x32xbf16>, vector<32x32xbf16>, vector<8x32xf32> -> vector<8x32xf32>
    %62 = vector.broadcast %59 : vector<1x32xf32> to vector<8x32xf32>
    %63 = arith.addf %61, %62 : vector<8x32xf32>
    %64 = arith.addf %63, %4 : vector<8x32xf32>
    %c0_26 = arith.constant 0 : index
    %c0_27 = arith.constant 0 : index
    %c0_28 = arith.constant 0 : index
    %65 = vector.load %arg10[%c0_26, %c0_27, %c0_28] : memref<1x1x32xf32, #tpu.memory_space<vmem>>, vector<1x1x32xf32>
    %66 = vector.shape_cast %65 : vector<1x1x32xf32> to vector<1x32xf32>
    %c0_29 = arith.constant 0 : index
    %c0_30 = arith.constant 0 : index
    %c0_31 = arith.constant 0 : index
    %67 = vector.load %arg11[%c0_29, %c0_30, %c0_31] : memref<1x1x32xf32, #tpu.memory_space<vmem>>, vector<1x1x32xf32>
    %68 = vector.shape_cast %67 : vector<1x1x32xf32> to vector<1x32xf32>
    %cst_32 = arith.constant dense<0.000000e+00> : vector<8xf32>
    %69 = vector.multi_reduction <add>, %64, %cst_32 [1] : vector<8x32xf32> to vector<8xf32>
    %70 = vector.shape_cast %69 : vector<8xf32> to vector<8x1xf32>
    %cst_33 = arith.constant 3.200000e+01 : f32
    %71 = vector.broadcast %cst_33 : f32 to vector<8x1xf32>
    %72 = arith.divf %70, %71 : vector<8x1xf32>
    %73 = vector.broadcast %72 : vector<8x1xf32> to vector<8x32xf32>
    %74 = arith.subf %64, %73 : vector<8x32xf32>
    %75 = arith.mulf %74, %74 : vector<8x32xf32>
    %cst_34 = arith.constant dense<0.000000e+00> : vector<8xf32>
    %76 = vector.multi_reduction <add>, %75, %cst_34 [1] : vector<8x32xf32> to vector<8xf32>
    %77 = vector.shape_cast %76 : vector<8xf32> to vector<8x1xf32>
    %cst_35 = arith.constant 3.200000e+01 : f32
    %78 = vector.broadcast %cst_35 : f32 to vector<8x1xf32>
    %79 = arith.divf %77, %78 : vector<8x1xf32>
    %80 = vector.broadcast %72 : vector<8x1xf32> to vector<8x32xf32>
    %81 = arith.subf %64, %80 : vector<8x32xf32>
    %cst_36 = arith.constant 9.99999996E-13 : f32
    %82 = vector.broadcast %cst_36 : f32 to vector<8x1xf32>
    %83 = arith.addf %79, %82 : vector<8x1xf32>
    %84 = math.rsqrt %83 : vector<8x1xf32>
    %85 = vector.broadcast %84 : vector<8x1xf32> to vector<8x32xf32>
    %86 = arith.mulf %81, %85 : vector<8x32xf32>
    %87 = vector.broadcast %66 : vector<1x32xf32> to vector<8x32xf32>
    %88 = arith.mulf %86, %87 : vector<8x32xf32>
    %89 = vector.broadcast %68 : vector<1x32xf32> to vector<8x32xf32>
    %90 = arith.addf %88, %89 : vector<8x32xf32>
    %c0_37 = arith.constant 0 : index
    %c0_38 = arith.constant 0 : index
    %c0_39 = arith.constant 0 : index
    %91 = vector.load %arg12[%c0_37, %c0_38, %c0_39] : memref<1x32x64xbf16, #tpu.memory_space<vmem>>, vector<1x32x64xbf16>
    %92 = vector.shape_cast %91 : vector<1x32x64xbf16> to vector<32x64xbf16>
    %c0_40 = arith.constant 0 : index
    %c0_41 = arith.constant 0 : index
    %c0_42 = arith.constant 0 : index
    %93 = vector.load %arg13[%c0_40, %c0_41, %c0_42] : memref<1x1x64xf32, #tpu.memory_space<vmem>>, vector<1x1x64xf32>
    %94 = vector.shape_cast %93 : vector<1x1x64xf32> to vector<1x64xf32>
    %95 = arith.truncf %90 : vector<8x32xf32> to vector<8x32xbf16>
    %cst_43 = arith.constant dense<0.000000e+00> : vector<8x64xf32>
    %96 = tpu.matmul %95, %92, %cst_43 {dimension_numbers = #tpu.dot_dimension_numbers<[1], [0], [0], [1], [0, 0, 1, 1], [], []>} : vector<8x32xbf16>, vector<32x64xbf16>, vector<8x64xf32> -> vector<8x64xf32>
    %97 = vector.broadcast %94 : vector<1x64xf32> to vector<8x64xf32>
    %98 = arith.addf %96, %97 : vector<8x64xf32>
    %99 = arith.mulf %98, %98 : vector<8x64xf32>
    %100 = arith.mulf %98, %99 : vector<8x64xf32>
    %cst_44 = arith.constant 4.471500e-02 : f32
    %101 = vector.broadcast %cst_44 : f32 to vector<8x64xf32>
    %102 = arith.mulf %101, %100 : vector<8x64xf32>
    %103 = arith.addf %98, %102 : vector<8x64xf32>
    %cst_45 = arith.constant 0.797884583 : f32
    %104 = vector.broadcast %cst_45 : f32 to vector<8x64xf32>
    %105 = arith.mulf %104, %103 : vector<8x64xf32>
    %106 = math.tanh %105 : vector<8x64xf32>
    %cst_46 = arith.constant 1.000000e+00 : f32
    %107 = vector.broadcast %cst_46 : f32 to vector<8x64xf32>
    %108 = arith.addf %107, %106 : vector<8x64xf32>
    %cst_47 = arith.constant 5.000000e-01 : f32
    %109 = vector.broadcast %cst_47 : f32 to vector<8x64xf32>
    %110 = arith.mulf %109, %108 : vector<8x64xf32>
    %111 = arith.mulf %98, %110 : vector<8x64xf32>
    %c0_48 = arith.constant 0 : index
    %c0_49 = arith.constant 0 : index
    %c0_50 = arith.constant 0 : index
    %112 = vector.load %arg14[%c0_48, %c0_49, %c0_50] : memref<1x64x32xbf16, #tpu.memory_space<vmem>>, vector<1x64x32xbf16>
    %113 = vector.shape_cast %112 : vector<1x64x32xbf16> to vector<64x32xbf16>
    %c0_51 = arith.constant 0 : index
    %c0_52 = arith.constant 0 : index
    %c0_53 = arith.constant 0 : index
    %114 = vector.load %arg15[%c0_51, %c0_52, %c0_53] : memref<1x1x32xf32, #tpu.memory_space<vmem>>, vector<1x1x32xf32>
    %115 = vector.shape_cast %114 : vector<1x1x32xf32> to vector<1x32xf32>
    %116 = arith.truncf %111 : vector<8x64xf32> to vector<8x64xbf16>
    %cst_54 = arith.constant dense<0.000000e+00> : vector<8x32xf32>
    %117 = tpu.matmul %116, %113, %cst_54 {dimension_numbers = #tpu.dot_dimension_numbers<[1], [0], [0], [1], [0, 0, 1, 1], [], []>} : vector<8x64xbf16>, vector<64x32xbf16>, vector<8x32xf32> -> vector<8x32xf32>
    %118 = vector.broadcast %115 : vector<1x32xf32> to vector<8x32xf32>
    %119 = arith.addf %117, %118 : vector<8x32xf32>
    %120 = arith.addf %119, %90 : vector<8x32xf32>
    %c0_55 = arith.constant 0 : index
    %c0_56 = arith.constant 0 : index
    %c0_57 = arith.constant 0 : index
    %121 = vector.load %arg16[%c0_55, %c0_56, %c0_57] : memref<1x1x32xf32, #tpu.memory_space<vmem>>, vector<1x1x32xf32>
    %122 = vector.shape_cast %121 : vector<1x1x32xf32> to vector<1x32xf32>
    %c0_58 = arith.constant 0 : index
    %c0_59 = arith.constant 0 : index
    %c0_60 = arith.constant 0 : index
    %123 = vector.load %arg17[%c0_58, %c0_59, %c0_60] : memref<1x1x32xf32, #tpu.memory_space<vmem>>, vector<1x1x32xf32>
    %124 = vector.shape_cast %123 : vector<1x1x32xf32> to vector<1x32xf32>
    %cst_61 = arith.constant dense<0.000000e+00> : vector<8xf32>
    %125 = vector.multi_reduction <add>, %120, %cst_61 [1] : vector<8x32xf32> to vector<8xf32>
    %126 = vector.shape_cast %125 : vector<8xf32> to vector<8x1xf32>
    %cst_62 = arith.constant 3.200000e+01 : f32
    %127 = vector.broadcast %cst_62 : f32 to vector<8x1xf32>
    %128 = arith.divf %126, %127 : vector<8x1xf32>
    %129 = vector.broadcast %128 : vector<8x1xf32> to vector<8x32xf32>
    %130 = arith.subf %120, %129 : vector<8x32xf32>
    %131 = arith.mulf %130, %130 : vector<8x32xf32>
    %cst_63 = arith.constant dense<0.000000e+00> : vector<8xf32>
    %132 = vector.multi_reduction <add>, %131, %cst_63 [1] : vector<8x32xf32> to vector<8xf32>
    %133 = vector.shape_cast %132 : vector<8xf32> to vector<8x1xf32>
    %cst_64 = arith.constant 3.200000e+01 : f32
    %134 = vector.broadcast %cst_64 : f32 to vector<8x1xf32>
    %135 = arith.divf %133, %134 : vector<8x1xf32>
    %136 = vector.broadcast %128 : vector<8x1xf32> to vector<8x32xf32>
    %137 = arith.subf %120, %136 : vector<8x32xf32>
    %cst_65 = arith.constant 9.99999996E-13 : f32
    %138 = vector.broadcast %cst_65 : f32 to vector<8x1xf32>
    %139 = arith.addf %135, %138 : vector<8x1xf32>
    %140 = math.rsqrt %139 : vector<8x1xf32>
    %141 = vector.broadcast %140 : vector<8x1xf32> to vector<8x32xf32>
    %142 = arith.mulf %137, %141 : vector<8x32xf32>
    %143 = vector.broadcast %122 : vector<1x32xf32> to vector<8x32xf32>
    %144 = arith.mulf %142, %143 : vector<8x32xf32>
    %145 = vector.broadcast %124 : vector<1x32xf32> to vector<8x32xf32>
    %146 = arith.addf %144, %145 : vector<8x32xf32>
    %c0_66 = arith.constant 0 : index
    %c0_67 = arith.constant 0 : index
    %c0_68 = arith.constant 0 : index
    %147 = vector.load %arg18[%c0_66, %c0_67, %c0_68] : memref<1x8x32xf32, #tpu.memory_space<vmem>>, vector<1x8x32xf32>
    %148 = vector.shape_cast %147 : vector<1x8x32xf32> to vector<8x32xf32>
    %149 = vector.shape_cast %146 : vector<8x32xf32> to vector<1x8x32xf32>
    tpu.vector_store %arg18[%c0_66, %c0_67, %c0_68], %149 {strides = array<i32>} : memref<1x8x32xf32, #tpu.memory_space<vmem>>, vector<1x8x32xf32>,
    return
  }
  func.func @transform_0(%arg0: i32, %arg1: i32) -> (i32, i32, i32) {
    %c0_i32 = arith.constant 0 : i32
    %c0_i32_0 = arith.constant 0 : i32
    %c0_i32_1 = arith.constant 0 : i32
    return %arg0, %c0_i32, %c0_i32_0 : i32, i32, i32
  }
  func.func @transform_1(%arg0: i32, %arg1: i32) -> (i32, i32) {
    %c0_i32 = arith.constant 0 : i32
    %c0_i32_0 = arith.constant 0 : i32
    %c0_i32_1 = arith.constant 0 : i32
    return %c0_i32, %c0_i32_0 : i32, i32
  }
  func.func @transform_2(%arg0: i32, %arg1: i32) -> (i32, i32) {
    %c0_i32 = arith.constant 0 : i32
    %c0_i32_0 = arith.constant 0 : i32
    %c0_i32_1 = arith.constant 0 : i32
    return %c0_i32, %c0_i32_0 : i32, i32
  }
  func.func @transform_3(%arg0: i32, %arg1: i32) -> (i32, i32) {
    %c0_i32 = arith.constant 0 : i32
    %c0_i32_0 = arith.constant 0 : i32
    %c0_i32_1 = arith.constant 0 : i32
    return %c0_i32, %c0_i32_0 : i32, i32
  }
  func.func @transform_4(%arg0: i32, %arg1: i32) -> (i32, i32, i32) {
    %c0_i32 = arith.constant 0 : i32
    %c0_i32_0 = arith.constant 0 : i32
    %c0_i32_1 = arith.constant 0 : i32
    return %arg1, %c0_i32, %c0_i32_0 : i32, i32, i32
  }
  func.func @transform_5(%arg0: i32, %arg1: i32) -> (i32, i32, i32) {
    %c0_i32 = arith.constant 0 : i32
    %c0_i32_0 = arith.constant 0 : i32
    %c0_i32_1 = arith.constant 0 : i32
    return %arg1, %c0_i32, %c0_i32_0 : i32, i32, i32
  }
  func.func @transform_6(%arg0: i32, %arg1: i32) -> (i32, i32, i32) {
    %c0_i32 = arith.constant 0 : i32
    %c0_i32_0 = arith.constant 0 : i32
    %c0_i32_1 = arith.constant 0 : i32
    return %arg1, %c0_i32, %c0_i32_0 : i32, i32, i32
  }
  func.func @transform_7(%arg0: i32, %arg1: i32) -> (i32, i32, i32) {
    %c0_i32 = arith.constant 0 : i32
    %c0_i32_0 = arith.constant 0 : i32
    %c0_i32_1 = arith.constant 0 : i32
    return %arg1, %c0_i32, %c0_i32_0 : i32, i32, i32
  }
  func.func @transform_8(%arg0: i32, %arg1: i32) -> (i32, i32, i32) {
    %c0_i32 = arith.constant 0 : i32
    %c0_i32_0 = arith.constant 0 : i32
    %c0_i32_1 = arith.constant 0 : i32
    return %arg1, %c0_i32, %c0_i32_0 : i32, i32, i32
  }
  func.func @transform_9(%arg0: i32, %arg1: i32) -> (i32, i32, i32) {
    %c0_i32 = arith.constant 0 : i32
    %c0_i32_0 = arith.constant 0 : i32
    %c0_i32_1 = arith.constant 0 : i32
    return %arg1, %c0_i32, %c0_i32_0 : i32, i32, i32
  }
  func.func @transform_10(%arg0: i32, %arg1: i32) -> (i32, i32, i32) {
    %c0_i32 = arith.constant 0 : i32
    %c0_i32_0 = arith.constant 0 : i32
    %c0_i32_1 = arith.constant 0 : i32
    return %arg1, %c0_i32, %c0_i32_0 : i32, i32, i32
  }
  func.func @transform_11(%arg0: i32, %arg1: i32) -> (i32, i32, i32) {
    %c0_i32 = arith.constant 0 : i32
    %c0_i32_0 = arith.constant 0 : i32
    %c0_i32_1 = arith.constant 0 : i32
    return %arg1, %c0_i32, %c0_i32_0 : i32, i32, i32
  }
  func.func @transform_12(%arg0: i32, %arg1: i32) -> (i32, i32, i32) {
    %c0_i32 = arith.constant 0 : i32
    %c0_i32_0 = arith.constant 0 : i32
    %c0_i32_1 = arith.constant 0 : i32
    return %arg1, %c0_i32, %c0_i32_0 : i32, i32, i32
  }
  func.func @transform_13(%arg0: i32, %arg1: i32) -> (i32, i32, i32) {
    %c0_i32 = arith.constant 0 : i32
    %c0_i32_0 = arith.constant 0 : i32
    %c0_i32_1 = arith.constant 0 : i32
    return %arg1, %c0_i32, %c0_i32_0 : i32, i32, i32
  }
  func.func @transform_14(%arg0: i32, %arg1: i32) -> (i32, i32, i32) {
    %c0_i32 = arith.constant 0 : i32
    %c0_i32_0 = arith.constant 0 : i32
    %c0_i32_1 = arith.constant 0 : i32
    return %arg1, %c0_i32, %c0_i32_0 : i32, i32, i32
  }
  func.func @transform_15(%arg0: i32, %arg1: i32) -> (i32, i32, i32) {
    %c0_i32 = arith.constant 0 : i32
    %c0_i32_0 = arith.constant 0 : i32
    %c0_i32_1 = arith.constant 0 : i32
    return %arg1, %c0_i32, %c0_i32_0 : i32, i32, i32
  }
  func.func @transform_16(%arg0: i32, %arg1: i32) -> (i32, i32, i32) {
    %c0_i32 = arith.constant 0 : i32
    %c0_i32_0 = arith.constant 0 : i32
    %c0_i32_1 = arith.constant 0 : i32
    return %arg0, %c0_i32, %c0_i32_0 : i32, i32, i32
  }
}

</mosaic_0001>

<bundles_post_ra>
// kernel: tpu_custom_call.1
= control target key start
LH: loop header
LB: loop body
LE: loop exit
PB: predicated region body
PF: predicated region fallthrough
CT: control target
= control target key end

     0   :  { %s2630_s0 = inlined_call_operand.hbm [shape: f32[2,8,32], index: 0, kind: input, shape index: {}]   ;;  %s2631_s1 = inlined_call_operand.hbm [shape: f32[8,32], index: 1, kind: input, shape index: {}]   ;;  %s2632_s2 = inlined_call_operand.vmem [shape: f32[1,32], index: 2, kind: input, shape index: {}]   ;;  %s2633_s3 = inlined_call_operand.hbm [shape: f32[1,32], index: 3, kind: input, shape index: {}]   ;;  %s2634_s4 = inlined_call_operand.vmem [shape: bf16[2,32,96], index: 4, kind: input, shape index: {}]   ;;  %s2635_s5 = inlined_call_operand.vmem [shape: f32[2,1,96], index: 5, kind: input, shape index: {}]   ;;  %s2636_s6 = inlined_call_operand.vmem [shape: bf16[2,32,32], index: 6, kind: input, shape index: {}]   ;;  %s2637_s7 = inlined_call_operand.vmem [shape: f32[2,1,32], index: 7, kind: input, shape index: {}]   ;;  %s2638_s8 = inlined_call_operand.vmem [shape: f32[2,1,32], index: 8, kind: input, shape index: {}]   ;;  %s2639_s9 = inlined_call_operand.vmem [shape: f32[2,1,32], index: 9, kind: input, shape index: {}]   ;;  %s2640_s10 = inlined_call_operand.vmem [shape: bf16[2,32,64], index: 10, kind: input, shape index: {}]   ;;  %s2641_s11 = inlined_call_operand.vmem [shape: f32[2,1,64], index: 11, kind: input, shape index: {}]   ;;  %s2642_s12 = inlined_call_operand.vmem [shape: bf16[2,64,32], index: 12, kind: input, shape index: {}]   ;;  %s2643_s13 = inlined_call_operand.vmem [shape: f32[2,1,32], index: 13, kind: input, shape index: {}]   ;;  %s2644_s14 = inlined_call_operand.vmem [shape: f32[2,1,32], index: 14, kind: input, shape index: {}]   ;;  %s2645_s15 = inlined_call_operand.vmem [shape: f32[2,1,32], index: 15, kind: input, shape index: {}]   ;;  %s2646_s16 = inlined_call_operand.hbm [shape: f32[2,8,32], index: 16, kind: output, shape index: {}]  }
   0x1   :  { %2666 = sst [smem:[#allocation25_spill]] %s2630_s0 }
   0x2   :  { %2667 = sst [smem:[#allocation26_spill]] %s2631_s1 }
   0x3   :  { %2668 = sst [smem:[#allocation27_spill]] %s2632_s2 }
   0x4   :  { %2669 = sst [smem:[#allocation28_spill]] %s2633_s3 }
   0x5   :  { %2670 = sst [smem:[#allocation29_spill]] %s2634_s4 }
   0x6   :  { %2671 = sst [smem:[#allocation30_spill]] %s2636_s6 }
   0x7   :  { %2672 = sst [smem:[#allocation31_spill]] %s2639_s9 }
   0x8   :  { %2673 = sst [smem:[#allocation32_spill]] %s2640_s10 }
   0x9   :  { %2674 = sst [smem:[#allocation33_spill]] %s2641_s11 }
   0xa   :  { %2675 = sst [smem:[#allocation34_spill]] %s2642_s12 }
   0xb   :  { %2676 = sst [smem:[#allocation35_spill]] %s2643_s13 }
   0xc   :  { %2677 = sst [smem:[#allocation36_spill]] %s2644_s14 }
   0xd   :  { %2678 = sst [smem:[#allocation37_spill]] %s2645_s15 }
   0xe   :  { %2679 = sst [smem:[#allocation38_spill]] %s2646_s16 }
   0xf   :  { %21 = vsyncpa [#allocation3], 0 }
  0x10   :  { %23 = vsyncpa [#allocation3 + $0x1], 0 }
  0x11   :  { %24 = vsyncpa [#allocation6], 0 }
  0x12   :  { %25 = vsyncpa [#allocation4], 0 }
  0x13   :  { %27 = vsyncpa [#allocation4 + $0x1], 0  ;;  %s2189_s21 = smov 0   ;;  %s2191_s22 = smov 0  }
  0x14   :  { %s2193_s23 = smov 0   ;;  %s2195_s24 = smov 0  }
  0x15   :  { %s2197_s25 = smov 0   ;;  %s2199_s26 = smov 0  }
  0x16   :  { %s2201_s27 = smov 0   ;;  %s2203_s28 = smov 0  }
  0x17 LB: > { %2680 = sst [smem:[#allocation12_spill]] %s2062_s21  ;;  %s1629_s29 = sadd.s32 4294967295, %s2090_s28   ;;  %s2090_s28 = sphi %s2203_s28, %s33_s28   ;;  %s2086_s27 = sphi %s2201_s27, %s2742_s27   ;;  %s2082_s26 = sphi %s2199_s26, %s2741_s26   ;;  %s2078_s25 = sphi %s2197_s25, %s2740_s25   ;;  %s2074_s24 = sphi %s2195_s24, %s2739_s24   ;;  %s2070_s23 = sphi %s2193_s23, %s2738_s23   ;;  %s2066_s22 = sphi %s2191_s22, %s2737_s22   ;;  %s2062_s21 = sphi %s2189_s21, %s2736_s21  }
  0x18   : > { %2681 = sst [smem:[#allocation13_spill]] %s2066_s22  ;;  %s1630_s30 = sadd.s32 4294967294, %s2090_s28  }
  0x19   : > { %2682 = sst [smem:[#allocation14_spill]] %s2070_s23  ;;  %p65_p0 = scmp.ne.s32.totalorder %s2066_s22, %s2062_s21 }
  0x1a   : > { %2683 = sst [smem:[#allocation15_spill]] %s2078_s25  ;;  %p2233_p1 = scmp.eq.s32.totalorder %s1629_s29, 0 }
  0x1b   : > { %2684 = sst [smem:[#allocation16_spill]] %s2082_s26  ;;  %p2237_p2 = scmp.eq.s32.totalorder %s1629_s29, 3 }
  0x1c   : > { %2685 = sst [smem:[#allocation17_spill]] %s2086_s27  ;;  %p470_p3 = scmp.eq.s32.totalorder %s1630_s30, 3 }
  0x1d   : > { %2686 = sst [smem:[#allocation18_spill]] %s2090_s28  ;;  %p2243_p4 = por %p2233_p1, %p65_p0 }
  0x1e   : > { %s2687_s0 = scalar_select %p2233_p1, 1, 0 }
  0x1f   : > { %s2688_s17 = scalar_select %p2237_p2, 1, 0 }
  0x20   : > { %s2689_s18 = scalar_select %p2243_p4, 1, 0 }
  0x21   : > { %p1631_p5 = scmp.ge.s32.totalorder %s2090_s28, 1  ;;  %p2248_p6 = por %p470_p3, %p65_p0 }
  0x22   : > { %p477_p7 = scmp.lt.s32.totalorder %s2090_s28, 5  ;;  %s2092_s29 = smov [#allocation5]  }
  0x23   : > { %s2690_s19 = scalar_select %p2248_p6, 1, 0 }
  0x24   : > { %p2253_p8 = pnand %p1631_p5, %p477_p7  ;;  %s490_s21 = sshll.u32 %s2092_s29, 4  ;;  %s491_s21 = int_to_ptr.vmem [resolvable:$true] %s490_s21 }
  0x25   : > { %2691 = sst [smem:[#allocation19_spill]] %s2690_s19  ;;  %s2093_s30 = smov [#allocation7]  }
  0x26   : > { %s2692_s20 = scalar_select %p2253_p8, 1, 0 }
  0x27   : > { %p1781_p9 = pneg %p2253_p8  ;;  %s504_s16 = sshll.u32 %s2093_s30, 4  ;;  %s2265_s16 = int_to_ptr.vmem [resolvable:$true] %s504_s16 }
  0x28   : > { %s2694_s1 = sld [smem:[#allocation26_spill]] }
  0x29   : > { %p2261_p10 = pnand %p1781_p9, %p2233_p1 }
  0x2b   : > { %p1904_p12 = pneg %p2261_p10 }
  0x2e   : > { %s1902_s15 = scalar_lea.hbm %s2694_s1, 128 }
  0x2f   : > { %p1903_p11 = scmp.ne.s32.totalorder %s2694_s1, %s1902_s15  ;;  %p1909_p3 = scmp.lt.u32.totalorder %s1902_s15, %s2694_s1 }
  0x31   : > { %p1905_p13 = pnand %p1904_p12, %p1903_p11 }
  0x33   : > { %p1906_p0 = pneg %p1905_p13 }
  0x35   : > { %p1911_p5 = pnand %p1909_p3, %p1906_p0 }
  0x37   : > { %1914 = shalt.err (!%p1911_p5)
}
  0x38   : > { %s1915_s12 = scalar_lea.vmem %s491_s21, 128  ;;  %p1923_p1 = scmp.lt.s32.totalorder %s491_s21, %s491_s21 }
  0x39   : > { %p1916_p7 = scmp.ne.s32.totalorder %s491_s21, %s1915_s12  ;;  %p1924_p4 = scmp.lt.s32.totalorder %s1915_s12, %s1915_s12 }
  0x3b   : > { %p1918_p9 = pnand %p1916_p7, %p1904_p12  ;;  %p1925_p8 = por %p1924_p4, %p1923_p1 }
  0x3d   : > { %p1919_p6 = pneg %p1918_p9 }
  0x3f   : > { %p1926_p2 = pnand %p1925_p8, %p1919_p6 }
  0x41   : > { %1929 = shalt.err (!%p1926_p2)
}
  0x42   : > { %1784 = dma.hbm_to_vmem [thread:$0]  (!%p2261_p10), %s2694_s1, 128, %s491_s21, [#allocation6]  }
  0x43   : > { %s2695_s3 = sld [smem:[#allocation28_spill]] }
  0x49   : > { %s1930_s19 = scalar_lea.hbm %s2695_s3, 16 }
  0x4a   : > { %p1931_p11 = scmp.ne.s32.totalorder %s2695_s3, %s1930_s19  ;;  %p1937_p2 = scmp.lt.u32.totalorder %s1930_s19, %s2695_s3 }
  0x4c   : > { %p1933_p1 = pnand %p1931_p11, %p1904_p12 }
  0x4e   : > { %p1934_p4 = pneg %p1933_p1 }
  0x50   : > { %p1939_p6 = pnand %p1937_p2, %p1934_p4 }
  0x52   : > { %1942 = shalt.err (!%p1939_p6)
}
  0x53   : > { %s1943_s21 = scalar_lea.vmem %s2265_s16, 16  ;;  %s1950_s2 = scalar_lea.vmem %s2265_s16, 32 }
  0x54   : > { %p1944_p8 = scmp.ne.s32.totalorder %s2265_s16, %s1943_s21  ;;  %p1951_p3 = scmp.lt.s32.totalorder %s2265_s16, %s2265_s16 }
  0x55   : > { %p1952_p5 = scmp.lt.s32.totalorder %s1950_s2, %s1943_s21 }
  0x56   : > { %p1946_p13 = pnand %p1944_p8, %p1904_p12 }
  0x57   : > { %p1953_p7 = por %p1952_p5, %p1951_p3 }
  0x58   : > { %p1947_p0 = pneg %p1946_p13 }
  0x5a   : > { %p1954_p9 = pnand %p1953_p7, %p1947_p0 }
  0x5c   : > { %1957 = shalt.err (!%p1954_p9)
}
  0x5d   : > { %1787 = dma.hbm_to_vmem [thread:$0]  (!%p2261_p10), %s2695_s3, 16, %s2265_s16, [#allocation6]  }
  0x5e   : > { %s42_s13 = sadd.s32 1, %s2082_s26  ;;  %s45_s15 = sadd.s32 1, %s2086_s27 }
  0x5f   : > { %p43_p12 = scmp.ge.s32.totalorder %s42_s13, 2  ;;  %s52_s25 = sadd.s32 1, %s2070_s23 }
  0x60   : > { %p59_p11 = scmp.ne.s32.totalorder %s2070_s23, %s2066_s22  ;;  %p60_p1 = scmp.eq.s32.totalorder %s2090_s28, 0 }
  0x61   : > { %s2744_s13 = smov (%p43_p12, %s42_s13), 0  ;;  %s2746_s15 = smov (!%p43_p12, %s45_s15), %s2086_s27 }
  0x62   : > { %2696 = sst [smem:[#allocation20_spill]] %s2744_s13  ;;  %p2324_p4 = por %p60_p1, %p59_p11 }
  0x63   : > { %p2698_p2 = scmp.ne.s32.totalorder %s2688_s17, 0  ;;  %p47_p10 = scmp.ge.s32.totalorder %s2746_s15, 2 }
  0x64   : > { %p1798_p8 = scmp.lt.s32.totalorder %s2090_s28, 4  ;;  %s515_s16 = sand.u32 1, %s2070_s23  }
  0x65   : > { %p2330_p6 = por %p2698_p2, %p59_p11  ;;  %s1636_s30 = sshll.u32 %s2086_s27, 7 }
  0x66   : > { %s2748_s15 = smov (%p47_p10, %s2746_s15), 0  ;;  %s1635_s12 = sshll.u32 %s515_s16, 3 }
  0x67   : > { %s2699_s29 = scalar_select %p2330_p6, 1, 0 }
  0x68   : > { %2701 = sst [smem:[#allocation22_spill]] %s2748_s15  ;;  %s49_s21 = ssub.s32 %s2086_s27, %s2748_s15 }
  0x69   : > { %2700 = sst [smem:[#allocation21_spill]] %s2699_s29  ;;  %p50_p13 = scmp.eq.s32.totalorder %s49_s21, 0 }
  0x6a   : > { %s2702_s14 = sld [smem:[#allocation25_spill]]  ;;  %s519_s17 = scalar_lea.vmem [#allocation2], %s1635_s12 }
  0x6b   : > { %s526_s3 = sshll.u32 %s519_s17, 4  ;;  %p2348_p0 = pnand %p1798_p8, %p2324_p4  ;;  %s2355_s3 = int_to_ptr.vmem [resolvable:$true] %s526_s3 }
  0x6c   : > { %s2353_s15 = scalar_select %p50_p13, %s2070_s23, %s52_s25  }
  0x6d   : > { %s516_s21 = scalar_lea.sflag [#allocation3], %s515_s16  ;;  %p1960_p5 = pneg %p2348_p0 }
  0x6e   : > { %2704 = sst [smem:[#allocation23_spill]] %s2353_s15 }
  0x70   : > { %s2344_s1 = scalar_lea.hbm %s2702_s14, %s1636_s30  ;;  %s1963_s2 = scalar_lea.hbm %s2702_s14, 256 }
  0x71   : > { %s1958_s30 = scalar_lea.hbm %s2344_s1, 128  ;;  %p1964_p12 = scmp.lt.u32.totalorder %s2344_s1, %s2702_s14 }
  0x72   : > { %p1959_p3 = scmp.ne.s32.totalorder %s2344_s1, %s1958_s30  ;;  %p1965_p11 = scmp.lt.u32.totalorder %s1963_s2, %s1958_s30 }
  0x73   : > { %p1967_p4 = scmp.lt.u32.totalorder %s1958_s30, %s2344_s1 }
  0x74   : > { %p1961_p7 = pnand %p1960_p5, %p1959_p3  ;;  %p1966_p1 = por %p1965_p11, %p1964_p12 }
  0x76   : > { %p1962_p9 = pneg %p1961_p7  ;;  %p1968_p2 = por %p1967_p4, %p1966_p1 }
  0x78   : > { %p1969_p10 = pnand %p1968_p2, %p1962_p9 }
  0x7a   : > { %1972 = shalt.err (!%p1969_p10)
}
  0x7b   : > { %s1973_s25 = scalar_lea.vmem %s2355_s3, 128  ;;  %s2094_s16 = smov [#allocation2]  }
  0x7c   : > { %p1974_p8 = scmp.ne.s32.totalorder %s2355_s3, %s1973_s25  ;;  %s1978_s19 = sshll.u32 %s2094_s16, 4  ;;  %s1979_s19 = int_to_ptr.vmem [resolvable:$false] %s1978_s19 }
  0x7d   : > { %s1980_s12 = scalar_lea.vmem %s1979_s19, 256  ;;  %p1981_p7 = scmp.lt.s32.totalorder %s2355_s3, %s1979_s19 }
  0x7e   : > { %p1976_p13 = pnand %p1974_p8, %p1960_p5  ;;  %p1982_p12 = scmp.lt.s32.totalorder %s1980_s12, %s1973_s25 }
  0x80   : > { %p1977_p3 = pneg %p1976_p13  ;;  %p1983_p11 = por %p1982_p12, %p1981_p7 }
  0x82   : > { %p1984_p1 = pnand %p1983_p11, %p1977_p3 }
  0x84   : > { %1987 = shalt.err (!%p1984_p1)
}
  0x85   : > { %1791 = dma.hbm_to_vmem [thread:$0]  (!%p2348_p0), %s2344_s1, 128, %s2355_s3, %s516_s21  }
  0x86   : > { %p2705_p9 = scmp.ne.s32.totalorder %s2692_s20, 0 }
  0x88   : > { %615 = sbr.rel (%p2705_p9) target bundleno = 3005 (0xbbd), region = 84 }
  0x8f   : > { %s2385_s30 = sand.u32 1, %s2066_s22   ;;  %p2707_p5 = scmp.ne.s32.totalorder %s2689_s18, 0 }
  0x90   : > { %2706 = sst [smem:[#allocation24_spill]] %s2385_s30  ;;  %s1638_s2 = sshll.u32 %s2385_s30, 3 }
  0x91   : > { %s618_s11 = scalar_lea.sflag [#allocation3], %s2385_s30  ;;  %s621_s17 = scalar_lea.vmem [#allocation2], %s1638_s2 }
  0x92   : > { %2049 = dma.done.wait (%p2707_p5), %s618_s11, 128  }
  0x93   : > { %2051 = vsyncadd (%p2707_p5), %s618_s11, 4294967168  ;;  %p2708_p4 = scmp.ne.s32.totalorder %s2687_s0, 0 }
  0x95   : > { %2053 = dma.done.wait (%p2708_p4), [#allocation6], 144  }
  0x96   : > { %2055 = vsyncadd (%p2708_p4), [#allocation6], 4294967152  ;;  %p722_p0 = scmp.lt.s32.totalorder %s2074_s24, 1  ;;  %s2709_s4 = sld [smem:[#allocation29_spill]] }
  0x97   : > { %s2710_s6 = sld [smem:[#allocation30_spill]]  ;;  %s2712_s10 = sld [smem:[#allocation32_spill]] }
  0x98   : > { %s2399_s1 = scalar_select %p722_p0, %s2074_s24, 1 }
  0x99   : > { %s2714_s27 = sld [smem:[#allocation34_spill]]  ;;  %s2715_s23 = sld [smem:[#allocation35_spill]] }
  0x9a   : > { %s1683_s3 = sshll.u32 %s2399_s1, 4  ;;  %s1686_s28 = sshll.u32 %s2399_s1, 5 }
  0x9b   : > { %s2716_s30 = sld [smem:[#allocation36_spill]]  ;;  %s2455_s16 = scalar_lea.vmem [#allocation8], %s1638_s2 }
  0x9c   : > { %s2409_s25 = scalar_lea.vmem %s2709_s4, %s1683_s3  ;;  %p1650_p2 = scmp.ne.s32.totalorder %s2074_s24, 0 }
  0x9d   : > { %s2414_s12 = scalar_lea.vmem %s2710_s6, %s1683_s3  ;;  %s2431_s4 = scalar_lea.vmem %s2712_s10, %s1683_s3  ;;  %v771_v0 = vld [vmem:[%s621_s17] sm:$0xff] (!%p1650_p2)  ;;  %v772_v1 = vld [vmem:[#allocation5] sm:$0xff] (!%p1650_p2)  ;;  %vm776_vm0 = vcmask (!%p1650_p2), 261120   ;;  %v1652_v15 = vld [vmem:[#allocation7] ss:$0 sm:$0xff] (!%p1650_p2) }
  0x9e   : > { %s2713_s6 = sld [smem:[#allocation33_spill]]  ;;  %s2717_s10 = sld [smem:[#allocation37_spill]]  ;;  %v773_v2 = vadd.f32 (!%p1650_p2), %v772_v1, %v771_v0 }
  0x9f   : > { %s2441_s29 = scalar_lea.vmem %s2714_s27, %s1686_s28  ;;  %s759_s18 = scalar_lea.vmem %s2715_s23, %s2399_s1 }
  0xa0   : > { %770 = sbr.rel (%p1650_p2) target bundleno = 474 (0x1da), region = 100  ;;  %v777_v3 = vsel (!%p1650_p2), %vm776_vm0, %v773_v2, 0.0  ;;  %s2718_s23 = sld [smem:[#allocation27_spill]] (!%p1650_p2) }
  0xa1   : > { %s762_s13 = scalar_lea.vmem %s2716_s30, %s2399_s1  ;;  %778 = vadd.xlane.f32.xlu0 (!%p1650_p2), %v777_v3 }
  0xa4   : > { %s751_s22 = scalar_lea.vmem %s2713_s6, %s2399_s1  ;;  %s765_s9 = scalar_lea.vmem %s2717_s10, %s2399_s1 }
  0xa6   : > { %v1651_v13 = vld [vmem:[%s2718_s23] ss:$0 sm:$0xff] (!%p1650_p2) }
 0x12e   : > { %v779_v4 = vpop.xlane.xlu0 %778 }
 0x12f   : > { %v781_v5 = vmul.f32 0.03125, %v779_v4 }
 0x131   : > { %v782_v6 = vsub.f32 %v773_v2, %v781_v5 }
 0x133   : > { %v783_v7 = vmul.f32 %v782_v6, %v782_v6 }
 0x135   : > { %v784_v8 = vsel %vm776_vm0, %v783_v7, 0.0 }
 0x136   : > { %785 = vadd.xlane.f32.xlu0 %v784_v8 }
 0x1c3   : > { %v786_v9 = vpop.xlane.xlu0 %785 }
 0x1c4   : > { %v787_v10 = vmul.f32 0.03125, %v786_v9 }
 0x1c6   : > { %v788_v11 = vadd.f32 1e-12, %v787_v10 }
 0x1c8   : > { %1876 = vrsqrt.f32 %v788_v11 }
 0x1d2   : > { %v1877_v12 = vpop.eup %1876 }
 0x1d3   : > { %v790_v14 = vmul.f32 %v1877_v12, %v782_v6 }
 0x1d5   : > { %v797_v16 = vmul.f32 %v1651_v13, %v790_v14 }
 0x1d7   : > { %v804_v17 = vadd.f32 %v1652_v15, %v797_v16 }
 0x1d9   : > { %805 = vst.msk [vmem:[%s2455_s16] sm:$0xff] %vm776_vm0, %v804_v17 }
 0x1da PF: > { %v1878_v18 = vld [vmem:[%s2409_s25] sm:$0xff]   ;;  %v2095_v19 = vmov 0.0   ;;  %v1879_v20 = vld [vmem:[%s2409_s25 + $0x8] sm:$0xff]   ;;  %vm2096_vm1 = vmmov 0   ;;  %vm831_vm2 = vcmask 261120   ;;  %s2719_s28 = scalar_lea.vmem %s2635_s5, %s2399_s1  ;;  %s2097_s30 = smov 96  }
 0x1db   : > { %1709 = vmatprep.subr.bf16.mxu0 %v2095_v19  ;;  %1717 = vmatprep.subr.bf16.mxu1 %v2095_v19  ;;  %v1653_v23 = vld [vmem:[%s2719_s28] ss:$0 sm:$0xff]  ;;  %s2098_s2 = smov 112   ;;  %s2099_s17 = smov 80   ;;  %vm881_vm3 = vcmask 130048   ;;  %vm928_vm4 = vcmask 64512  }
 0x1dc   : > { %1710 = vmatpush3.bf16.msra.mxu0 %v1878_v18  ;;  %1713 = vmatprep.mubr.msk.bf16.mxu0 %vm2096_vm1, %v2095_v19  ;;  %s2100_s0 = smov 64   ;;  %s2101_s25 = smov 48   ;;  %vm946_vm5 = vcmask 1043456   ;;  %v1880_v5 = vld [vmem:[%s2414_s12] sm:$0xff]   ;;  %v1881_v6 = vld [vmem:[%s2414_s12 + $0x8] sm:$0xff]   ;;  %vm1320_vm6 = vcmask 523264  }
 0x1dd   : > { %1711 = vmatprep.subr.bf16.mxu0 %v2095_v19  ;;  %1719 = vmatprep.mubr.msk.bf16.mxu1 %vm2096_vm1, %v2095_v19  ;;  %s2102_s19 = smov 16   ;;  %s2720_s11 = scalar_lea.vmem %s2637_s7, %s2399_s1 }
 0x1de   : > { %v1661_v18 = vld [vmem:[%s2720_s11] ss:$0 sm:$0xff]  ;;  %s2721_s20 = scalar_lea.vmem %s2638_s8, %s2399_s1  ;;  %s2726_s28 = sld [smem:[#allocation15_spill]] }
 0x1df   : > { %s1409_s11 = sshll.u32 %s2455_s16, 4  ;;  %s2576_s11 = int_to_ptr.vmem [resolvable:$true] %s1409_s11 }
 0x1e0   : > { %v2472_v21 = vld [vmem:[%s2455_s16] sm:$0xff]  ;;  %1712 = vmatpush3.bf16.msra.mxu0 %v1879_v20  ;;  %s1988_s21 = scalar_lea.vmem %s2576_s11, 128 }
 0x1e1   : > { %v812_v22 = vpack.c.bf16 %v2472_v21, %v2472_v21  ;;  %1723 = vmatprep.subr.bf16.mxu0 %v2095_v19  ;;  %p1989_p10 = scmp.ne.s32.totalorder %s2576_s11, %s1988_s21 }
 0x1e3   : > { %1714 = vmatmul.mubr.msk.bf16.vlgmr.msra.gmra.mrb[0].mxu0 %vm831_vm2, %v812_v22  ;;  %p1990_p8 = pnand %p1989_p10, %p2330_p6 }
 0x1e4   : > { %1725 = vmatprep.mubr.msk.bf16.mxu0 %vm2096_vm1, %v2095_v19  ;;  %s1680_s14 = sshll.u32 %s2726_s28, 7 }
 0x1e5   : > { %p1991_p13 = pneg %p1990_p8 }
 0x2b6   : > { %v869_v24 = vpop.f32.mrb[0].mxu0 }
 0x2b7   : > { %v870_v25 = vadd.f32 %v1653_v23, %v869_v24  ;;  %v1715_v26 = vpop.f32.mrb[1].mxu0 }
 0x2b8   : > { %v872_v27 = vpop.f32.mrb[2].mxu0 }
 0x2b9   : > { %v877_v28 = vpack.c.bf16 %v870_v25, %v870_v25  ;;  %v1716_v29 = vpop.f32.mrb[3].mxu0  ;;  %v875_v30 = vmul.f32 0.25, %v870_v25 }
 0x2bb   : > { %879 = vrot.lane.b32.xlu0 %v877_v28, %s2097_s30  ;;  %v876_v31 = vpack.c.bf16 %v875_v30, %v875_v30 }
 0x2bd   : > { %991 = vrot.lane.b32.xlu1 %v876_v31, %s2098_s2 }
 0x2bf   : > { %993 = vrot.lane.b32.xlu0 %v877_v28, %s2099_s17 }
 0x32d   : > { %v880_v32 = vpop.permute.xlu0 %879 }
 0x32e   : > { %v886_v33 = vsel %vm881_vm3, %v880_v32, 0 }
 0x32f   : > { %1718 = vmatpush3.bf16.xpose.msra.mxu1 %v886_v33  ;;  %v992_v36 = vpop.permute.xlu1 %991  ;;  %v1882_v33 = vld [vmem:[%s2431_s4] sm:$0xff]  }
 0x330   : > { %1729 = vmatprep.subr.bf16.mxu1 %v2095_v19 }
 0x331   : > { %v994_v34 = vpop.permute.xlu0 %993 }
 0x332   : > { %v999_v35 = vsel %vm881_vm3, %v994_v34, 0  ;;  %v1883_v34 = vld [vmem:[%s2431_s4 + $0x8] sm:$0xff]   ;;  %s2722_s4 = sld [smem:[#allocation31_spill]] }
 0x336   : > { %1720 = vmatmul.mubr.msk.bf16.vlgmr.msra.gmra.mrb[0].mxu1 %vm881_vm3, %v876_v31 }
 0x337   : > { %1730 = vmatpush3.bf16.xpose.msra.mxu1 %v999_v35  ;;  %1731 = vmatprep.mubr.msk.bf16.mxu1 %vm2096_vm1, %v2095_v19 }
 0x338   : > { %1741 = vmatprep.subr.bf16.mxu1 %v2095_v19  ;;  %s2723_s6 = scalar_lea.vmem %s2722_s4, %s2399_s1 }
 0x33e   : > { %1732 = vmatmul.mubr.msk.bf16.vlgmr.msra.gmra.mrb[4].mxu1 %vm881_vm3, %v992_v36 }
 0x33f   : > { %1745 = vmatprep.mubr.msk.bf16.mxu1 %vm2096_vm1, %v2095_v19  ;;  %1742 = vmatpush3.bf16.msra.mxu1 %v1880_v5 }
 0x340   : > { %1743 = vmatprep.subr.bf16.mxu1 %v2095_v19 }
 0x343   : > { %1744 = vmatpush3.bf16.msra.mxu1 %v1881_v6 }
 0x344   : > { %1757 = vmatprep.subr.bf16.mxu1 %v2095_v19 }
 0x409   : > { %v922_v37 = vpop.f32.mrb[0].mxu1 }
 0x40a   : > { %v1721_v38 = vpop.f32.mrb[1].mxu1  ;;  %v929_v39 = vsel %vm928_vm4, %v922_v37, -inf }
 0x40b   : > { %930 = vmax.xlane.f32.xlu1 %v929_v39  ;;  %v925_v40 = vpop.f32.mrb[2].mxu1  ;;  %v1665_v38 = vld [vmem:[%s2721_s20] ss:$0 sm:$0xff]  ;;  %s2731_s20 = sld [smem:[#allocation38_spill]] }
 0x40c   : > { %v1722_v41 = vpop.f32.mrb[3].mxu1  ;;  %v1666_v40 = vld [vmem:[%s2723_s6] ss:$0 sm:$0xff] }
 0x411   : > { %v1035_v42 = vpop.f32.mrb[4].mxu1  ;;  %s2574_s3 = scalar_lea.hbm %s2731_s20, %s1680_s14 }
 0x412   : > { %v1733_v43 = vpop.f32.mrb[5].mxu1  ;;  %v1041_v44 = vsel %vm928_vm4, %v1035_v42, -inf }
 0x413   : > { %1042 = vmax.xlane.f32.xlu0 %v1041_v44  ;;  %v1038_v45 = vpop.f32.mrb[6].mxu1  ;;  %v1884_v44 = vld [vmem:[%s2441_s29] sm:$0xff]  }
 0x414   : > { %v1734_v46 = vpop.f32.mrb[7].mxu1  ;;  %v1885_v45 = vld [vmem:[%s2441_s29 + $0x8] sm:$0xff]  }
 0x415   : > { %v1886_v46 = vld [vmem:[%s2441_s29 + $0x10] sm:$0xff]  }
 0x498   : > { %v931_v47 = vpop.xlane.xlu1 %930 }
 0x499   : > { %v932_v48 = vsub.f32 %v922_v37, %v931_v47  ;;  %v1887_v47 = vld [vmem:[%s2441_s29 + $0x18] sm:$0xff]  }
 0x49b   : > { %v933_v49 = vmul.f32 1.442695, %v932_v48  ;;  %v1667_v48 = vld [vmem:[%s751_s22] ss:$0 sm:$0xff] }
 0x49d   : > { %1888 = vpow2.f32 %v933_v49 }
 0x4a0   : > { %v1043_v50 = vpop.xlane.xlu0 %1042 }
 0x4a1   : > { %v1044_v51 = vsub.f32 %v1035_v42, %v1043_v50 }
 0x4a3   : > { %v1045_v52 = vmul.f32 1.442695, %v1044_v51 }
 0x4a5   : > { %1890 = vpow2.f32 %v1045_v52 }
 0x4a7   : > { %v1889_v53 = vpop.eup %1888 }
 0x4a8   : > { %v935_v54 = vsel %vm928_vm4, %v1889_v53, 0.0 }
 0x4a9   : > { %936 = vadd.xlane.f32.xlu0 %v935_v54 }
 0x4af   : > { %v1891_v55 = vpop.eup %1890 }
 0x4b0   : > { %v1047_v56 = vsel %vm928_vm4, %v1891_v55, 0.0 }
 0x4b1   : > { %1048 = vadd.xlane.f32.xlu1 %v1047_v56 }
 0x4bf   : > { %941 = vrot.lane.b32.xlu0 %v877_v28, %s2100_s0 }
 0x4c2   : > { %1053 = vrot.lane.b32.xlu1 %v877_v28, %s2101_s25 }
 0x536   : > { %v937_v57 = vpop.xlane.xlu0 %936 }
 0x537   : > { %1892 = vrcp.f32 %v937_v57 }
 0x53a   : > { %v942_v58 = vpop.permute.xlu0 %941 }
 0x53b   : > { %v948_v59 = vsel %vm946_vm5, %v942_v58, 0 }
 0x53c   : > { %1724 = vmatpush3.bf16.msra.mxu0 %v948_v59 }
 0x53d   : > { %1735 = vmatprep.subr.bf16.mxu0 %v2095_v19 }
 0x53e   : > { %v1049_v60 = vpop.xlane.xlu1 %1048 }
 0x53f   : > { %1894 = vrcp.f32 %v1049_v60 }
 0x541   : > { %v1893_v61 = vpop.eup %1892 }
 0x542   : > { %v939_v62 = vmul.f32 %v1893_v61, %v1889_v53  ;;  %v1054_v63 = vpop.permute.xlu1 %1053 }
 0x543   : > { %v1059_v1 = vsel %vm946_vm5, %v1054_v63, 0  ;;  %v1671_v63 = vld [vmem:[%s759_s18] ss:$0 sm:$0xff]  ;;  %s2727_s18 = sld [smem:[#allocation24_spill]] }
 0x544   : > { %v940_v0 = vpack.c.bf16 %v939_v62, %v939_v62 }
 0x546   : > { %1726 = vmatmul.mubr.msk.bf16.vlgmr.msra.gmra.mrb[4].mxu0 %vm928_vm4, %v940_v0 }
 0x547   : > { %1736 = vmatpush3.bf16.msra.mxu0 %v1059_v1  ;;  %1737 = vmatprep.mubr.msk.bf16.mxu0 %vm2096_vm1, %v2095_v19 }
 0x548   : > { %1749 = vmatprep.subr.bf16.mxu0 %v2095_v19 }
 0x549   : > { %v1895_v2 = vpop.eup %1894 }
 0x54a   : > { %v1051_v3 = vmul.f32 %v1895_v2, %v1891_v55 }
 0x54c   : > { %v1052_v4 = vpack.c.bf16 %v1051_v3, %v1051_v3 }
 0x54e   : > { %1738 = vmatmul.mubr.msk.bf16.vlgmr.msra.gmra.mrb[8].mxu0 %vm928_vm4, %v1052_v4 }
 0x54f   : > { %1753 = vmatprep.mubr.msk.bf16.mxu0 %vm2096_vm1, %v2095_v19  ;;  %1750 = vmatpush3.bf16.msra.mxu0 %v1882_v33 }
 0x550   : > { %1751 = vmatprep.subr.bf16.mxu0 %v2095_v19 }
 0x553   : > { %1752 = vmatpush3.bf16.msra.mxu0 %v1883_v34 }
 0x619   : > { %v984_v7 = vpop.f32.mrb[4].mxu0 }
 0x61a   : > { %v1727_v8 = vpop.f32.mrb[5].mxu0 }
 0x61b   : > { %v987_v9 = vpop.f32.mrb[6].mxu0 }
 0x61c   : > { %v1728_v10 = vpop.f32.mrb[7].mxu0 }
 0x621   : > { %v1095_v11 = vpop.f32.mrb[8].mxu0 }
 0x622   : > { %1102 = vrot.lane.b32.xlu1 %v1095_v11, %s2102_s19  ;;  %v1739_v12 = vpop.f32.mrb[9].mxu0 }
 0x623   : > { %v1098_v13 = vpop.f32.mrb[10].mxu0 }
 0x624   : > { %v1740_v14 = vpop.f32.mrb[11].mxu0 }
 0x694   : > { %v1103_v15 = vpop.permute.xlu1 %1102 }
 0x695   : > { %v1105_v16 = vsel %vm881_vm3, %v984_v7, %v1103_v15 }
 0x696   : > { %v1111_v17 = vpack.c.bf16 %v1105_v16, %v1105_v16  ;;  %v1677_v16 = vld [vmem:[%s762_s13] ss:$0 sm:$0xff]  ;;  %s1396_s13 = scalar_lea.sflag [#allocation4], %s2727_s18 }
 0x698   : > { %1746 = vmatmul.mubr.msk.bf16.vlgmr.msra.gmra.mrb[8].mxu1 %vm831_vm2, %v1111_v17 }
 0x699   : > { %1765 = vmatprep.mubr.msk.bf16.mxu1 %vm2096_vm1, %v2095_v19  ;;  %1758 = vmatpush3.bf16.msra.mxu1 %v1884_v44 }
 0x69a   : > { %1759 = vmatprep.subr.bf16.mxu1 %v2095_v19 }
 0x69d   : > { %1760 = vmatpush3.bf16.msra.mxu1 %v1885_v45 }
 0x69e   : > { %1761 = vmatprep.subr.bf16.mxu1 %v2095_v19 }
 0x6a1   : > { %1762 = vmatpush3.bf16.msra.mxu1 %v1886_v46 }
 0x6a2   : > { %1763 = vmatprep.subr.bf16.mxu1 %v2095_v19 }
 0x6a5   : > { %1764 = vmatpush3.bf16.msra.mxu1 %v1887_v47 }
 0x76b   : > { %v1167_v20 = vpop.f32.mrb[8].mxu1 }
 0x76c   : > { %v1168_v22 = vadd.f32 %v1661_v18, %v1167_v20  ;;  %v1747_v23 = vpop.f32.mrb[9].mxu1  ;;  %v1678_v18 = vld [vmem:[%s765_s9] ss:$0 sm:$0xff]  ;;  %s2103_s9 = smov [#allocation8]  }
 0x76d   : > { %v1170_v24 = vpop.f32.mrb[10].mxu1  ;;  %s1992_s1 = sshll.u32 %s2103_s9, 4  ;;  %s1993_s1 = int_to_ptr.vmem [resolvable:$false] %s1992_s1 }
 0x76e   : > { %v1748_v25 = vpop.f32.mrb[11].mxu1  ;;  %v1173_v26 = vadd.f32 %v1168_v22, %v2472_v21  ;;  %s1994_s4 = scalar_lea.vmem %s1993_s1, 256  ;;  %p1995_p3 = scmp.lt.s32.totalorder %s2576_s11, %s1993_s1 }
 0x76f   : > { %p1996_p7 = scmp.lt.s32.totalorder %s1994_s4, %s1988_s21 }
 0x770   : > { %v1176_v27 = vsel %vm831_vm2, %v1173_v26, 0.0 }
 0x771   : > { %1177 = vadd.xlane.f32.xlu0 %v1176_v27  ;;  %p1997_p12 = por %p1996_p7, %p1995_p3 }
 0x773   : > { %p1998_p11 = pnand %p1997_p12, %p1991_p13 }
 0x7fe   : > { %v1178_v28 = vpop.xlane.xlu0 %1177 }
 0x7ff   : > { %v1180_v29 = vmul.f32 0.03125, %v1178_v28 }
 0x801   : > { %v1181_v30 = vsub.f32 %v1173_v26, %v1180_v29 }
 0x803   : > { %v1182_v31 = vmul.f32 %v1181_v30, %v1181_v30 }
 0x805   : > { %v1183_v32 = vsel %vm831_vm2, %v1182_v31, 0.0 }
 0x806   : > { %1184 = vadd.xlane.f32.xlu1 %v1183_v32 }
 0x893   : > { %v1185_v21 = vpop.xlane.xlu1 %1184 }
 0x894   : > { %v1186_v35 = vmul.f32 0.03125, %v1185_v21 }
 0x896   : > { %v1187_v36 = vadd.f32 1e-12, %v1186_v35 }
 0x898   : > { %1896 = vrsqrt.f32 %v1187_v36 }
 0x8a2   : > { %v1897_v37 = vpop.eup %1896 }
 0x8a3   : > { %v1189_v39 = vmul.f32 %v1897_v37, %v1181_v30 }
 0x8a5   : > { %v1196_v41 = vmul.f32 %v1665_v38, %v1189_v39 }
 0x8a7   : > { %v1203_v42 = vadd.f32 %v1666_v40, %v1196_v41 }
 0x8a9   : > { %v1209_v43 = vpack.c.bf16 %v1203_v42, %v1203_v42 }
 0x8ab   : > { %1754 = vmatmul.mubr.msk.bf16.vlgmr.msra.gmra.mrb[12].mxu0 %vm831_vm2, %v1209_v43 }
 0x97e   : > { %v1265_v49 = vpop.f32.mrb[12].mxu0 }
 0x97f   : > { %v1266_v50 = vadd.f32 %v1667_v48, %v1265_v49  ;;  %v1755_v51 = vpop.f32.mrb[13].mxu0 }
 0x980   : > { %v1268_v52 = vpop.f32.mrb[14].mxu0 }
 0x981   : > { %v1271_v53 = vmul.f32 %v1266_v50, %v1266_v50  ;;  %v1756_v54 = vpop.f32.mrb[15].mxu0 }
 0x983   : > { %v1272_v55 = vmul.f32 %v1271_v53, %v1266_v50 }
 0x985   : > { %v1273_v56 = vmul.f32 0.044715, %v1272_v55 }
 0x987   : > { %v1274_v57 = vadd.f32 %v1273_v56, %v1266_v50 }
 0x989   : > { %v1275_v58 = vmul.f32 0.7978846, %v1274_v57 }
 0x98b   : > { %1898 = vtanh.f32 %v1275_v58 }
 0x995   : > { %v1899_v19 = vpop.eup %1898 }
 0x996   : > { %v1277_v59 = vadd.f32 1.0, %v1899_v19 }
 0x998   : > { %v1278_v60 = vmul.f32 0.5, %v1277_v59 }
 0x99a   : > { %v1279_v61 = vmul.f32 %v1278_v60, %v1266_v50 }
 0x99c   : > { %v1289_v62 = vpack.c.bf16 %v1279_v61, %v1279_v61 }
 0x99e   : > { %1766 = vmatmul.mubr.msk.bf16.vlgmr.msra.gmra.mrb[12].mxu1 %vm1320_vm6, %v1289_v62 }
 0xa71   : > { %v1358_v0 = vpop.f32.mrb[12].mxu1 }
 0xa72   : > { %v1359_v1 = vadd.f32 %v1671_v63, %v1358_v0  ;;  %v1767_v2 = vpop.f32.mrb[13].mxu1 }
 0xa73   : > { %v1361_v3 = vpop.f32.mrb[14].mxu1 }
 0xa74   : > { %v1768_v4 = vpop.f32.mrb[15].mxu1  ;;  %v1364_v5 = vadd.f32 %v1359_v1, %v1203_v42 }
 0xa76   : > { %v1367_v6 = vsel %vm831_vm2, %v1364_v5, 0.0 }
 0xa77   : > { %1368 = vadd.xlane.f32.xlu0 %v1367_v6 }
 0xb04   : > { %v1369_v7 = vpop.xlane.xlu0 %1368 }
 0xb05   : > { %v1370_v8 = vmul.f32 0.03125, %v1369_v7 }
 0xb07   : > { %v1371_v9 = vsub.f32 %v1364_v5, %v1370_v8 }
 0xb09   : > { %v1372_v10 = vmul.f32 %v1371_v9, %v1371_v9 }
 0xb0b   : > { %v1373_v11 = vsel %vm831_vm2, %v1372_v10, 0.0 }
 0xb0c   : > { %1374 = vadd.xlane.f32.xlu0 %v1373_v11 }
 0xb99   : > { %v1375_v12 = vpop.xlane.xlu0 %1374 }
 0xb9a   : > { %v1376_v13 = vmul.f32 0.03125, %v1375_v12 }
 0xb9c   : > { %v1377_v14 = vadd.f32 1e-12, %v1376_v13 }
 0xb9e   : > { %1900 = vrsqrt.f32 %v1377_v14 }
 0xba8   : > { %v1901_v15 = vpop.eup %1900 }
 0xba9   : > { %v1379_v17 = vmul.f32 %v1901_v15, %v1371_v9 }
 0xbab   : > { %v1386_v20 = vmul.f32 %v1677_v16, %v1379_v17 }
 0xbad   : > { %v1393_v22 = vadd.f32 %v1678_v18, %v1386_v20 }
 0xbaf   : > { %1394 = vst.msk [vmem:[%s2455_s16] sm:$0xff] %vm831_vm2, %v1393_v22 }
 0xbb0   : > { %2001 = shalt.err (!%p1998_p11)
}
 0xbb1   : > { %s2002_s16 = scalar_lea.hbm %s2574_s3, 128  ;;  %s2006_s23 = scalar_lea.hbm %s2731_s20, 256 }
 0xbb2   : > { %p2003_p1 = scmp.ne.s32.totalorder %s2574_s3, %s2002_s16  ;;  %p2007_p4 = scmp.lt.u32.totalorder %s2574_s3, %s2731_s20 }
 0xbb3   : > { %p2008_p0 = scmp.lt.u32.totalorder %s2006_s23, %s2002_s16  ;;  %p2010_p10 = scmp.lt.u32.totalorder %s2002_s16, %s2574_s3 }
 0xbb4   : > { %p2004_p9 = pnand %p2003_p1, %p2330_p6 }
 0xbb5   : > { %p2009_p2 = por %p2008_p0, %p2007_p4 }
 0xbb6   : > { %p2005_p5 = pneg %p2004_p9 }
 0xbb7   : > { %p2011_p8 = por %p2010_p10, %p2009_p2 }
 0xbb9   : > { %p2012_p13 = pnand %p2011_p8, %p2005_p5 }
 0xbbb   : > { %2015 = shalt.err (!%p2012_p13)
}
 0xbbc   : > { %1779 = dma.vmem_to_hbm [thread:$0]  (%p2330_p6), %s2576_s11, 128, %s2574_s3, %s1396_s13  }
 0xbbd PF: > { %s2732_s29 = sld [smem:[#allocation18_spill]]  ;;  %s2733_s27 = sld [smem:[#allocation12_spill]] }
 0xbbe   : > { %s2734_s28 = sld [smem:[#allocation19_spill]] }
 0xbc3   : > { %p1801_p3 = scmp.ge.s32.totalorder %s2732_s29, 2  ;;  %s1421_s18 = sand.u32 1, %s2733_s27  }
 0xbc4   : > { %p2735_p7 = scmp.ne.s32.totalorder %s2734_s28, 0  ;;  %s1422_s2 = scalar_lea.sflag [#allocation4], %s1421_s18 }
 0xbc6   : > { %p1793_p12 = pnand %p1801_p3, %p2735_p7 }
 0xbc8   : > { %2057 = dma.done.wait (!%p1793_p12), %s1422_s2, 128  }
 0xbc9   : > { %2059 = vsyncadd (!%p1793_p12), %s1422_s2, 4294967168  ;;  %s33_s28 = sadd.s32 1, %s2732_s29   ;;  %s2736_s21 = sld [smem:[#allocation13_spill]] }
 0xbca   : > { %p30_p11 = scmp.ge.s32.totalorder %s33_s28, 6   ;;  %s2737_s22 = sld [smem:[#allocation14_spill]] }
 0xbcb   : > { %s2738_s23 = sld [smem:[#allocation23_spill]]  ;;  %s2739_s24 = sld [smem:[#allocation16_spill]] }
 0xbcc   : > { %s2740_s25 = sld [smem:[#allocation17_spill]]  ;;  %s2741_s26 = sld [smem:[#allocation20_spill]] }
 0xbcd   : > { %s2742_s27 = sld [smem:[#allocation22_spill]]  ;;  %32 = sbr.rel (!%p30_p11) target bundleno = 23 (0x17), region = 177 }
 0xbd4   :  { %1427 = vsyncpa [#allocation3], 1 }
 0xbd5   :  { %1429 = vsyncpa [#allocation3 + $0x1], 1 }
 0xbd6   :  { %1430 = vsyncpa [#allocation6], 1 }
 0xbd7   :  { %1431 = vsyncpa [#allocation4], 1 }
 0xbd8   :  { %1433 = vsyncpa [#allocation4 + $0x1], 1 }

</bundles_post_ra>
